<compile_context>
chip_gen: v7x
topology: tpu7x:2x2x1
jax: 0.10.0
libtpu: 0.0.40
codegen_flags: <defaults>
</compile_context>

<pallas_src>
import jax
import jax.numpy as jnp
from jax.experimental import pallas as pl
from jax.experimental.pallas import tpu as pltpu


def _round_up(x, m):
    return ((x + m - 1) // m) * m


# ----------------------------------------------------------------------------
# Kernels
# ----------------------------------------------------------------------------
def _mwd_epilogue(z_acc, c_row, a01_row):
    # z is mathematically a sum of squares -> clamp at 0 to kill any f32
    # cancellation error from the expanded quadratic.
    z = jnp.maximum(z_acc + c_row, 0.0)
    y = jnp.exp(-z)                                   # EUP
    # out = y + andor01*(1-2y) == andor01 + (1-2*andor01)*y  (one VPU fma each)
    return a01_row + (1.0 - 2.0 * a01_row) * y


def mwd_kernel_single(x_ref, a_ref, b_ref, c_ref, andor_ref, o_ref):
    """Whole K reduction in one grid step: no scratch, straight to o_ref."""
    xt = x_ref[...]
    z = (jnp.dot(xt * xt, a_ref[...], preferred_element_type=jnp.float32)
         + jnp.dot(xt, b_ref[...], preferred_element_type=jnp.float32))
    o_ref[...] = _mwd_epilogue(z, c_ref[...], andor_ref[...])


def mwd_kernel_acc(x_ref, a_ref, b_ref, c_ref, andor_ref, o_ref, acc_ref):
    """K-tiled reduction with f32 VMEM accumulator (P3 init/epilogue)."""
    k = pl.program_id(2)

    @pl.when(k == 0)
    def _():
        acc_ref[...] = jnp.zeros_like(acc_ref)

    xt = x_ref[...]
    # Two MXU matmuls over the same K tile into one accumulator; the x*x
    # square is VPU work hidden under the MXU.
    acc_ref[...] += (jnp.dot(xt * xt, a_ref[...], preferred_element_type=jnp.float32)
                     + jnp.dot(xt, b_ref[...], preferred_element_type=jnp.float32))

    @pl.when(k == pl.num_programs(2) - 1)
    def _():
        o_ref[...] = _mwd_epilogue(acc_ref[...], c_ref[...], andor_ref[...])


# ----------------------------------------------------------------------------
# Wrapper
# ----------------------------------------------------------------------------
def prepare_mwd_params(w, u, andor01, *, tn_cap=512, tk_cap=512,
                       matmul_dtype=jnp.float32):
    """Weight-only prep (cacheable across forwards for inference)."""
    Fout, Fin = w.shape
    u2 = u * u
    A = jnp.transpose(u2)                              # (Fin, Fout)
    Bm = jnp.transpose(-2.0 * u2 * w)                  # (Fin, Fout)
    c = jnp.sum(u2 * (w * w), axis=1)[None, :]         # (1, Fout)  f32 bias

    TN = min(tn_cap, _round_up(Fout, 128))
    TK = min(tk_cap, _round_up(Fin, 128))
    pad_N = _round_up(Fout, TN)
    pad_K = _round_up(Fin, TK)

    A = jnp.pad(A, ((0, pad_K - Fin), (0, pad_N - Fout))).astype(matmul_dtype)
    Bm = jnp.pad(Bm, ((0, pad_K - Fin), (0, pad_N - Fout))).astype(matmul_dtype)
    c = jnp.pad(c.astype(jnp.float32), ((0, 0), (0, pad_N - Fout)))
    a01 = jnp.pad(andor01.astype(jnp.float32), ((0, 0), (0, pad_N - Fout)))

    return dict(A=A, Bm=Bm, c=c, andor=a01,
                Fin=Fin, Fout=Fout, TN=TN, TK=TK,
                pad_N=pad_N, pad_K=pad_K, matmul_dtype=matmul_dtype)


def mwd_apply(x, params, *, tb_cap=256):
    """x: (B, Fin).  Runs the Pallas kernel on prepared params."""
    B, Fin = x.shape
    assert Fin == params["Fin"], (Fin, params["Fin"])
    Fout = params["Fout"]
    TN, TK = params["TN"], params["TK"]
    pad_N, pad_K = params["pad_N"], params["pad_K"]
    mm_dtype = params["matmul_dtype"]

    TB = min(tb_cap, _round_up(B, 8))
    pad_B = _round_up(B, TB)
    # v7x has 2 TensorCores: if everything fits one output tile but the batch
    # is splittable, halve TB so a >=2-tile "parallel" grid exists.
    if pad_B // TB == 1 and pad_N // TN == 1 and pad_B >= 16:
        TB = _round_up(-(-pad_B // 2), 8)
        pad_B = _round_up(B, TB)

    xp = jnp.pad(x, ((0, pad_B - B), (0, pad_K - Fin))).astype(mm_dtype)

    nb, nn, nk = pad_B // TB, pad_N // TN, pad_K // TK
    itemsize = jnp.dtype(mm_dtype).itemsize

    cost = pl.CostEstimate(
        flops=int(4 * pad_B * pad_K * pad_N),            # two matmuls
        transcendentals=int(pad_B * pad_N),
        bytes_accessed=int(itemsize * (pad_B * pad_K + 2 * pad_K * pad_N)
                           + 4 * (pad_B * pad_N + 2 * pad_N)),
    )

    if nk == 1:
        # Small-Fin fast path: no accumulator scratch, no zero-init.
        grid = (nb, nn)
        in_specs = [
            pl.BlockSpec((TB, pad_K), lambda i, j: (i, 0)),   # x
            pl.BlockSpec((pad_K, TN), lambda i, j: (0, j)),   # A  = (u^2)^T
            pl.BlockSpec((pad_K, TN), lambda i, j: (0, j)),   # Bm = (-2u^2w)^T
            pl.BlockSpec((1, TN), lambda i, j: (0, j)),       # c bias row
            pl.BlockSpec((1, TN), lambda i, j: (0, j)),       # andor01 row
        ]
        out_spec = pl.BlockSpec((TB, TN), lambda i, j: (i, j))
        kernel = mwd_kernel_single
        scratch = []
        sem = ("parallel", "parallel")
    else:
        grid = (nb, nn, nk)
        in_specs = [
            pl.BlockSpec((TB, TK), lambda i, j, k: (i, k)),   # x
            pl.BlockSpec((TK, TN), lambda i, j, k: (k, j)),   # A
            pl.BlockSpec((TK, TN), lambda i, j, k: (k, j)),   # Bm
            pl.BlockSpec((1, TN), lambda i, j, k: (0, j)),    # c
            pl.BlockSpec((1, TN), lambda i, j, k: (0, j)),    # andor01
        ]
        out_spec = pl.BlockSpec((TB, TN), lambda i, j, k: (i, j))
        kernel = mwd_kernel_acc
        scratch = [pltpu.VMEM((TB, TN), jnp.float32)]
        sem = ("parallel", "parallel", "arbitrary")

    out = pl.pallas_call(
        kernel,
        out_shape=jax.ShapeDtypeStruct((pad_B, pad_N), jnp.float32),
        grid_spec=pltpu.PrefetchScalarGridSpec(
            num_scalar_prefetch=0,
            grid=grid,
            in_specs=in_specs,
            out_specs=out_spec,
            scratch_shapes=scratch,
        ),
        compiler_params=pltpu.CompilerParams(dimension_semantics=sem),
        cost_estimate=cost,
    )(xp, params["A"], params["Bm"], params["c"], params["andor"])

    return out[:B, :Fout]


def mwd_forward(x, w, u, andor01, *, tb_cap=256, tn_cap=512, tk_cap=512,
                matmul_dtype=jnp.float32):
    """Convenience one-shot forward (prep + apply). Cache prep for inference."""
    params = prepare_mwd_params(w, u, andor01, tn_cap=tn_cap, tk_cap=tk_cap,
                                matmul_dtype=matmul_dtype)
    return mwd_apply(x, params, tb_cap=tb_cap)


def mwd_reference(x, w, u, andor01):
    """Pure-JAX reference mirroring the PyTorch forward literally."""
    xx = x[:, None, :]                               # (B, 1, Fin)
    xuw = u * (xx - w)                               # (B, Fout, Fin)
    z = jnp.sum(xuw * xuw, axis=-1)                  # (B, Fout)
    y = jnp.exp(-z)
    return y + andor01 * (1.0 - 2.0 * y)


if __name__ == "__main__":
    key = jax.random.PRNGKey(0)

    def make_inputs(key, batch, fin, fout):
        kx, kw, ku, ka = jax.random.split(key, 4)
        # Parameter init mirroring __init__: w ~ U(min_input=0, max_input=1),
        # u ~ U(0.2, 0.7), andor01 ~ random {0,1}.
        x = jax.random.uniform(kx, (batch, fin), jnp.float32, 0.0, 1.0)
        w = jax.random.uniform(kw, (fout, fin), jnp.float32, 0.0, 1.0)
        u = jax.random.uniform(ku, (fout, fin), jnp.float32, 0.2, 0.7)
        a01 = jax.random.randint(ka, (1, fout), 0, 2).astype(jnp.float32)
        return x, w, u, a01

    # --- Test 1: small module-sized shapes, f32, single-K-step fast path ----
    k1, k2 = jax.random.split(key)
    x, w, u, a01 = make_inputs(k1, batch=8, fin=32, fout=16)
    out = jax.block_until_ready(jax.jit(mwd_forward)(x, w, u, a01))
    ref = mwd_reference(x, w, u, a01)
    assert out.shape == (8, 16)
    assert jnp.allclose(out, ref, atol=1e-5, rtol=1e-5), (
        f"f32 single-K max abs err {jnp.max(jnp.abs(out - ref))}")

    # --- Test 2: K-tiled accumulator path (tk_cap forces 2 K steps) ---------
    x2, w2, u2, a012 = make_inputs(k2, batch=16, fin=256, fout=64)
    fwd_acc = jax.jit(lambda *a: mwd_forward(*a, tk_cap=128))
    out2 = jax.block_until_ready(fwd_acc(x2, w2, u2, a012))
    ref2 = mwd_reference(x2, w2, u2, a012)
    assert out2.shape == (16, 64)
    assert jnp.allclose(out2, ref2, atol=1e-5, rtol=1e-4), (
        f"f32 multi-K max abs err {jnp.max(jnp.abs(out2 - ref2))}")

    # --- Test 3: bf16 MXU operands (opt-in), validated at loose tolerance ---
    fwd_bf16 = jax.jit(lambda *a: mwd_forward(*a, matmul_dtype=jnp.bfloat16))
    out3 = jax.block_until_ready(fwd_bf16(x, w, u, a01))
    assert jnp.allclose(out3, ref, atol=5e-2, rtol=5e-2), (
        f"bf16 max abs err {jnp.max(jnp.abs(out3 - ref))}")

    print("KERNEL_OK")
</pallas_src>

<mosaic_0001>
module attributes {stable_mosaic.version = 11 : i64} {
  func.func @mwd_kernel_single(%arg0: i32, %arg1: i32, %arg2: memref<8x128xf32, #tpu.memory_space<vmem>>, %arg3: memref<128x128xf32, #tpu.memory_space<vmem>>, %arg4: memref<128x128xf32, #tpu.memory_space<vmem>>, %arg5: memref<1x128xf32, #tpu.memory_space<vmem>>, %arg6: memref<1x128xf32, #tpu.memory_space<vmem>>, %arg7: memref<8x128xf32, #tpu.memory_space<vmem>>) attributes {dimension_semantics = [#tpu.dimension_semantics<parallel>, #tpu.dimension_semantics<parallel>], iteration_bounds = array<i64: 1, 1>, scalar_prefetch = 0 : i64, scratch_operands = 0 : i64, tpu.core_type = #tpu.core_type<tc>, window_params = [{transform_indices = @transform_0, window_bounds = array<i64: 8, 128>}, {transform_indices = @transform_1, window_bounds = array<i64: 128, 128>}, {transform_indices = @transform_2, window_bounds = array<i64: 128, 128>}, {transform_indices = @transform_3, window_bounds = array<i64: 1, 128>}, {transform_indices = @transform_4, window_bounds = array<i64: 1, 128>}, {transform_indices = @transform_5, window_bounds = array<i64: 8, 128>}]} {
    %c0 = arith.constant 0 : index
    %c0_0 = arith.constant 0 : index
    %0 = vector.load %arg2[%c0, %c0_0] : memref<8x128xf32, #tpu.memory_space<vmem>>, vector<8x128xf32>
    %1 = arith.mulf %0, %0 : vector<8x128xf32>
    %c0_1 = arith.constant 0 : index
    %c0_2 = arith.constant 0 : index
    %2 = vector.load %arg3[%c0_1, %c0_2] : memref<128x128xf32, #tpu.memory_space<vmem>>, vector<128x128xf32>
    %cst = arith.constant dense<0.000000e+00> : vector<8x128xf32>
    %3 = tpu.matmul %1, %2, %cst {dimension_numbers = #tpu.dot_dimension_numbers<[1], [0], [0], [1], [0, 0, 1, 1], [], []>} : vector<8x128xf32>, vector<128x128xf32>, vector<8x128xf32> -> vector<8x128xf32>
    %c0_3 = arith.constant 0 : index
    %c0_4 = arith.constant 0 : index
    %4 = vector.load %arg4[%c0_3, %c0_4] : memref<128x128xf32, #tpu.memory_space<vmem>>, vector<128x128xf32>
    %cst_5 = arith.constant dense<0.000000e+00> : vector<8x128xf32>
    %5 = tpu.matmul %0, %4, %cst_5 {dimension_numbers = #tpu.dot_dimension_numbers<[1], [0], [0], [1], [0, 0, 1, 1], [], []>} : vector<8x128xf32>, vector<128x128xf32>, vector<8x128xf32> -> vector<8x128xf32>
    %6 = arith.addf %3, %5 : vector<8x128xf32>
    %c0_6 = arith.constant 0 : index
    %c0_7 = arith.constant 0 : index
    %7 = vector.load %arg5[%c0_6, %c0_7] : memref<1x128xf32, #tpu.memory_space<vmem>>, vector<1x128xf32>
    %c0_8 = arith.constant 0 : index
    %c0_9 = arith.constant 0 : index
    %8 = vector.load %arg6[%c0_8, %c0_9] : memref<1x128xf32, #tpu.memory_space<vmem>>, vector<1x128xf32>
    %9 = vector.broadcast %7 : vector<1x128xf32> to vector<8x128xf32>
    %10 = arith.addf %6, %9 : vector<8x128xf32>
    %cst_10 = arith.constant 0.000000e+00 : f32
    %11 = vector.broadcast %cst_10 : f32 to vector<8x128xf32>
    %12 = arith.maximumf %10, %11 : vector<8x128xf32>
    %cst_11 = arith.constant 0.000000e+00 : f32
    %13 = vector.broadcast %cst_11 : f32 to vector<8x128xf32>
    %14 = arith.subf %13, %12 : vector<8x128xf32>
    %15 = math.exp %14 : vector<8x128xf32>
    %cst_12 = arith.constant 2.000000e+00 : f32
    %16 = vector.broadcast %cst_12 : f32 to vector<1x128xf32>
    %17 = arith.mulf %16, %8 : vector<1x128xf32>
    %cst_13 = arith.constant 1.000000e+00 : f32
    %18 = vector.broadcast %cst_13 : f32 to vector<1x128xf32>
    %19 = arith.subf %18, %17 : vector<1x128xf32>
    %20 = vector.broadcast %19 : vector<1x128xf32> to vector<8x128xf32>
    %21 = arith.mulf %20, %15 : vector<8x128xf32>
    %22 = vector.broadcast %8 : vector<1x128xf32> to vector<8x128xf32>
    %23 = arith.addf %22, %21 : vector<8x128xf32>
    %c0_14 = arith.constant 0 : index
    %c0_15 = arith.constant 0 : index
    %24 = vector.load %arg7[%c0_14, %c0_15] : memref<8x128xf32, #tpu.memory_space<vmem>>, vector<8x128xf32>
    tpu.vector_store %arg7[%c0_14, %c0_15], %23 {strides = array<i32>} : memref<8x128xf32, #tpu.memory_space<vmem>>, vector<8x128xf32>,
    return
  }
  func.func @transform_0(%arg0: i32, %arg1: i32) -> (i32, i32) {
    %c0_i32 = arith.constant 0 : i32
    %c0_i32_0 = arith.constant 0 : i32
    return %arg0, %c0_i32 : i32, i32
  }
  func.func @transform_1(%arg0: i32, %arg1: i32) -> (i32, i32) {
    %c0_i32 = arith.constant 0 : i32
    %c0_i32_0 = arith.constant 0 : i32
    return %c0_i32, %arg1 : i32, i32
  }
  func.func @transform_2(%arg0: i32, %arg1: i32) -> (i32, i32) {
    %c0_i32 = arith.constant 0 : i32
    %c0_i32_0 = arith.constant 0 : i32
    return %c0_i32, %arg1 : i32, i32
  }
  func.func @transform_3(%arg0: i32, %arg1: i32) -> (i32, i32) {
    %c0_i32 = arith.constant 0 : i32
    %c0_i32_0 = arith.constant 0 : i32
    return %c0_i32, %arg1 : i32, i32
  }
  func.func @transform_4(%arg0: i32, %arg1: i32) -> (i32, i32) {
    %c0_i32 = arith.constant 0 : i32
    %c0_i32_0 = arith.constant 0 : i32
    return %c0_i32, %arg1 : i32, i32
  }
  func.func @transform_5(%arg0: i32, %arg1: i32) -> (i32, i32) {
    %c0_i32 = arith.constant 0 : i32
    return %arg0, %arg1 : i32, i32
  }
}

</mosaic_0001>

<bundles_post_ra>
// kernel: mwd_forward.1
= control target key start
LH: loop header
LB: loop body
LE: loop exit
PB: predicated region body
PF: predicated region fallthrough
CT: control target
= control target key end

     0   :  { %v422_v3 = vmov 0.0|0.0   ;;  %vm423_vm0 = vmmov 0   ;;  %v424_v11 = vmov 0.0   ;;  %s589_s0 = inlined_call_operand.vmem [shape: f32[8,128], index: 0, kind: input, shape index: {}]   ;;  %s590_s1 = inlined_call_operand.vmem [shape: f32[128,128], index: 1, kind: input, shape index: {}]   ;;  %s591_s2 = inlined_call_operand.vmem [shape: f32[128,128], index: 2, kind: input, shape index: {}]   ;;  %s592_s3 = inlined_call_operand.vmem [shape: f32[1,128], index: 3, kind: input, shape index: {}]   ;;  %s593_s4 = inlined_call_operand.vmem [shape: f32[1,128], index: 4, kind: input, shape index: {}]   ;;  %s594_s5 = inlined_call_operand.hbm [shape: f32[8,128], index: 5, kind: output, shape index: {}]  }
   0x1   :  { %v39_v0 = vld [vmem:[%s591_s2] sm:$0xff]  ;;  %v40_v1 = vld [vmem:[%s591_s2 + $0x8] sm:$0xff]  ;;  %344 = vmatprep.subr.bf16.mxu0 %v422_v3  ;;  %368 = vmatprep.subr.bf16.mxu1 %v422_v3  ;;  %v41_v6 = vld [vmem:[%s591_s2 + $0x10] sm:$0xff] }
   0x2   :  { %v23_v2 = vld [vmem:[%s590_s1] sm:$0xff]  ;;  %v345_v4 = vpack.c.bf16 %v40_v1, %v39_v0  ;;  %v24_v5 = vld [vmem:[%s590_s1 + $0x8] sm:$0xff]  ;;  %v42_v7 = vld [vmem:[%s591_s2 + $0x18] sm:$0xff]  ;;  %306 = vmatprep.mubr.msk.f32.mxu0 %vm423_vm0, %v424_v11  ;;  %341 = vmatprep.mubr.msk.f32.mxu1 %vm423_vm0, %v424_v11 }
   0x3   :  { %v369_v8 = vpack.c.bf16 %v24_v5, %v23_v2  ;;  %v25_v9 = vld [vmem:[%s590_s1 + $0x10] sm:$0xff]  ;;  %v26_v10 = vld [vmem:[%s590_s1 + $0x18] sm:$0xff]  ;;  %v348_v12 = vpack.c.bf16 %v42_v7, %v41_v6  ;;  %v43_v14 = vld [vmem:[%s591_s2 + $0x20] sm:$0xff] }
   0x4   :  { %346 = vmatpush3.bf16.msra.mxu0 %v345_v4  ;;  %v372_v13 = vpack.c.bf16 %v26_v10, %v25_v9  ;;  %v44_v15 = vld [vmem:[%s591_s2 + $0x28] sm:$0xff]  ;;  %v27_v16 = vld [vmem:[%s590_s1 + $0x20] sm:$0xff]  ;;  %v45_v20 = vld [vmem:[%s591_s2 + $0x30] sm:$0xff] }
   0x5   :  { %370 = vmatpush3.bf16.msra.mxu1 %v369_v8  ;;  %347 = vmatprep.subr.bf16.mxu0 %v422_v3  ;;  %v28_v17 = vld [vmem:[%s590_s1 + $0x28] sm:$0xff]  ;;  %v351_v18 = vpack.c.bf16 %v44_v15, %v43_v14  ;;  %v46_v21 = vld [vmem:[%s591_s2 + $0x38] sm:$0xff]  ;;  %v29_v22 = vld [vmem:[%s590_s1 + $0x30] sm:$0xff] }
   0x6   :  { %371 = vmatprep.subr.bf16.mxu1 %v422_v3  ;;  %v375_v19 = vpack.c.bf16 %v28_v17, %v27_v16  ;;  %v30_v23 = vld [vmem:[%s590_s1 + $0x38] sm:$0xff]  ;;  %v354_v24 = vpack.c.bf16 %v46_v21, %v45_v20 }
   0x8   :  { %349 = vmatpush3.bf16.msra.mxu0 %v348_v12 }
   0x9   :  { %373 = vmatpush3.bf16.msra.mxu1 %v372_v13  ;;  %350 = vmatprep.subr.bf16.mxu0 %v422_v3 }
   0xa   :  { %374 = vmatprep.subr.bf16.mxu1 %v422_v3 }
   0xc   :  { %352 = vmatpush3.bf16.msra.mxu0 %v351_v18 }
   0xd   :  { %10 = vsyncpa [#allocation3], 0  ;;  %376 = vmatpush3.bf16.msra.mxu1 %v375_v19  ;;  %353 = vmatprep.subr.bf16.mxu0 %v422_v3  ;;  %v378_v25 = vpack.c.bf16 %v30_v23, %v29_v22  ;;  %v47_v26 = vld [vmem:[%s591_s2 + $0x40] sm:$0xff]  ;;  %v48_v27 = vld [vmem:[%s591_s2 + $0x48] sm:$0xff]  ;;  %v211_v60 = vlaneseq }
   0xe   :  { %377 = vmatprep.subr.bf16.mxu1 %v422_v3  ;;  %v31_v28 = vld [vmem:[%s590_s1 + $0x40] sm:$0xff]  ;;  %v32_v29 = vld [vmem:[%s590_s1 + $0x48] sm:$0xff]  ;;  %v357_v30 = vpack.c.bf16 %v48_v27, %v47_v26  ;;  %v49_v32 = vld [vmem:[%s591_s2 + $0x50] sm:$0xff] }
   0xf   :  { %v381_v31 = vpack.c.bf16 %v32_v29, %v31_v28  ;;  %v50_v33 = vld [vmem:[%s591_s2 + $0x58] sm:$0xff]  ;;  %v33_v34 = vld [vmem:[%s590_s1 + $0x50] sm:$0xff]  ;;  %v51_v38 = vld [vmem:[%s591_s2 + $0x60] sm:$0xff]  ;;  %v212_v1 = vshrl.u32 %v211_v60, 7 }
  0x10   :  { %355 = vmatpush3.bf16.msra.mxu0 %v354_v24  ;;  %v34_v35 = vld [vmem:[%s590_s1 + $0x58] sm:$0xff]  ;;  %v360_v36 = vpack.c.bf16 %v50_v33, %v49_v32  ;;  %v52_v39 = vld [vmem:[%s591_s2 + $0x68] sm:$0xff]  ;;  %v35_v40 = vld [vmem:[%s590_s1 + $0x60] sm:$0xff] }
  0x11   :  { %379 = vmatpush3.bf16.msra.mxu1 %v378_v25  ;;  %356 = vmatprep.subr.bf16.mxu0 %v422_v3  ;;  %v384_v37 = vpack.c.bf16 %v34_v35, %v33_v34  ;;  %v36_v41 = vld [vmem:[%s590_s1 + $0x68] sm:$0xff]  ;;  %v363_v42 = vpack.c.bf16 %v52_v39, %v51_v38  ;;  %v53_v44 = vld [vmem:[%s591_s2 + $0x70] sm:$0xff]  ;;  %v54_v45 = vld [vmem:[%s591_s2 + $0x78] sm:$0xff] }
  0x12   :  { %380 = vmatprep.subr.bf16.mxu1 %v422_v3  ;;  %v387_v43 = vpack.c.bf16 %v36_v41, %v35_v40  ;;  %v37_v46 = vld [vmem:[%s590_s1 + $0x70] sm:$0xff]  ;;  %v38_v47 = vld [vmem:[%s590_s1 + $0x78] sm:$0xff]  ;;  %v366_v48 = vpack.c.bf16 %v54_v45, %v53_v44  ;;  %v21_v50 = vld [vmem:[%s589_s0] sm:$0xff] }
  0x13   :  { %v390_v49 = vpack.c.bf16 %v38_v47, %v37_v46  ;;  %v22_v51 = vmul.f32 %v21_v50, %v21_v50  ;;  %v239_v54 = vld [vmem:[%s592_s3] ss:$0 sm:$0xff]  ;;  %s425_s3 = smov [#allocation2]  }
  0x14   :  { %358 = vmatpush3.bf16.msra.mxu0 %v357_v30  ;;  %v196_v62 = vld [vmem:[%s593_s4] sm:$0x1]  ;;  %s231_s10 = sshll.u32 %s425_s3, 4  ;;  %s232_s10 = int_to_ptr.vmem [resolvable:$true] %s231_s10 }
  0x15   :  { %382 = vmatpush3.bf16.msra.mxu1 %v381_v31  ;;  %359 = vmatprep.subr.bf16.mxu0 %v422_v3  ;;  %v208_v0 = vmul.f32 2.0, %v196_v62  ;;  %s398_s11 = scalar_lea.vmem %s232_s10, 128  ;;  %p403_p1 = scmp.lt.s32.totalorder %s232_s10, %s232_s10 }
  0x16   :  { %383 = vmatprep.subr.bf16.mxu1 %v422_v3  ;;  %p399_p0 = scmp.ne.s32.totalorder %s232_s10, %s398_s11  ;;  %p404_p2 = scmp.lt.s32.totalorder %s398_s11, %s398_s11 }
  0x17   :  { %v209_v2 = vsub.f32 1.0, %v208_v0 }
  0x18   :  { %361 = vmatpush3.bf16.msra.mxu0 %v360_v36  ;;  %p405_p3 = por %p404_p2, %p403_p1 }
  0x19   :  { %385 = vmatpush3.bf16.msra.mxu1 %v384_v37  ;;  %362 = vmatprep.subr.bf16.mxu0 %v422_v3 }
  0x1a   :  { %386 = vmatprep.subr.bf16.mxu1 %v422_v3  ;;  %p406_p4 = pnand %p405_p3, %p399_p0 }
  0x1c   :  { %364 = vmatpush3.bf16.msra.mxu0 %v363_v42 }
  0x1d   :  { %388 = vmatpush3.bf16.msra.mxu1 %v387_v43  ;;  %365 = vmatprep.subr.bf16.mxu0 %v422_v3 }
  0x1e   :  { %389 = vmatprep.subr.bf16.mxu1 %v422_v3  ;;  %v213_v3 = vsub.s32 0, %v212_v1 }
  0x20   :  { %367 = vmatpush3.bf16.msra.mxu0 %v366_v48  ;;  %v214_v4 = vrot.slane %v209_v2, %v213_v3  ;;  %v221_v5 = vrot.slane %v196_v62, %v213_v3 }
  0x21   :  { %391 = vmatpush3.bf16.msra.mxu1 %v390_v49 }
  0x23   :  { %307 = vmatmul.mubr.f32.vlgmr.msra.gmra.mrb[0].mxu0 %v21_v50 }
  0x24   :  { %342 = vmatmul.mubr.f32.vlgmr.msra.gmra.mrb[0].mxu1 %v22_v51 }
  0xf6   :  { %v121_v52 = vpop.f32.mrb[0].mxu0 }
  0xf7   :  { %v191_v53 = vpop.f32.mrb[0].mxu1  ;;  %v308_v55 = vpop.f32.mrb[1].mxu0 }
  0xf8   :  { %v192_v56 = vadd.f32 %v191_v53, %v121_v52  ;;  %v343_v57 = vpop.f32.mrb[1].mxu1 }
  0xfa   :  { %v203_v58 = vadd.f32 %v239_v54, %v192_v56 }
  0xfc   :  { %v204_v59 = vmax.f32 %v203_v58, 0.0 }
  0xfe   :  { %v205_v61 = vsub.f32 0.0, %v204_v59 }
 0x100   :  { %v206_v63 = vmul.f32 1.442695, %v205_v61 }
 0x102   :  { %396 = vpow2.f32 %v206_v63 }
 0x10c   :  { %v397_v6 = vpop.eup %396 }
 0x10d   :  { %v216_v7 = vmul.f32 %v397_v6, %v214_v4 }
 0x10f   :  { %v223_v8 = vadd.f32 %v221_v5, %v216_v7 }
 0x111   :  { %224 = vst [vmem:[#allocation2] sm:$0xff] %v223_v8 }
 0x112   :  { %409 = shalt.err (!%p406_p4)
}
 0x113   :  { %s410_s13 = scalar_lea.hbm %s594_s5, 128 }
 0x114   :  { %p411_p5 = scmp.ne.s32.totalorder %s594_s5, %s410_s13  ;;  %p414_p6 = scmp.lt.u32.totalorder %s410_s13, %s594_s5 }
 0x116   :  { %p416_p7 = pnand %p414_p6, %p411_p5 }
 0x118   :  { %419 = shalt.err (!%p416_p7)
}
 0x119   :  { %234 = dma.vmem_to_hbm [thread:$0]  %s232_s10, 128, %s594_s5, [#allocation3]  }
 0x11a   :  { %420 = dma.done.wait [#allocation3], 128  }
 0x11b   :  { %421 = vsyncadd [#allocation3], 4294967168 }
 0x11c   :  { %238 = vsyncpa [#allocation3], 1 }

</bundles_post_ra>
